<compile_context>
chip_gen: v6e
topology: v6e:2x2x1
jax: 0.10.0
libtpu: 0.0.40
codegen_flags: <defaults>
</compile_context>

<pallas_src>
import jax
import jax.numpy as jnp
import numpy as np
from jax.experimental import pallas as pl
from jax.experimental.pallas import tpu as pltpu


def _locked_dropout_kernel(x_ref, mask_ref, o_ref):
    # x block: (T_TILE, N); mask block: (1, N), broadcast over the T tile.
    o_ref[...] = x_ref[...] * mask_ref[...]


def locked_dropout(x, dropout=0.5, *, key=None, training=True):
    """Pallas TPU implementation of LockedDropout.forward.

    x: (T, B, H) array. Returns x unchanged if not training or dropout == 0.
    """
    if not training or not dropout:
        return x
    if not (0.0 <= float(dropout) < 1.0):
        # PyTorch would silently produce NaN/inf for p >= 1; be explicit.
        raise ValueError(f"dropout must be in [0, 1), got {dropout}")
    if key is None:
        key = jax.random.PRNGKey(0)

    T, B, H = x.shape
    N = B * H
    keep_prob = 1.0 - float(dropout)

    # Precompute the scaled, locked mask once (plain JAX). Scale in f32, then
    # cast to x.dtype (matches torch, which builds the mask in x's dtype).
    keep = jax.random.bernoulli(key, p=keep_prob, shape=(1, N))
    mask = (keep.astype(jnp.float32) / jnp.float32(keep_prob)).astype(x.dtype)

    x2d = x.reshape(T, N)

    # Tile T so each block is ~2 MiB (fits comfortably under v5e's 16 MiB
    # scoped-VMEM default with double buffering; also fine on v6e/v7x).
    itemsize = jnp.dtype(x.dtype).itemsize
    target_bytes = 2 * 1024 * 1024
    rows = max(1, target_bytes // max(1, N * itemsize))
    if rows >= T:
        t_tile = T           # whole array in one block (lane-dense, 1 step)
    else:
        t_tile = max(8, (rows // 8) * 8)  # multiple of 8 for (8,128) tiling
    grid = (pl.cdiv(T, t_tile),)

    out2d = pl.pallas_call(
        _locked_dropout_kernel,
        out_shape=jax.ShapeDtypeStruct((T, N), x.dtype),
        grid=grid,
        in_specs=[
            pl.BlockSpec((t_tile, N), lambda t: (t, 0)),
            # Constant block index -> mask DMA'd once, resident across grid.
            pl.BlockSpec((1, N), lambda t: (0, 0)),
        ],
        out_specs=pl.BlockSpec((t_tile, N), lambda t: (t, 0)),
        compiler_params=pltpu.CompilerParams(
            dimension_semantics=("parallel",),
        ),
    )(x2d, mask)

    return out2d.reshape(T, B, H)


if __name__ == "__main__":
    key = jax.random.PRNGKey(0)
    k_x, k_mask = jax.random.split(key)

    T, B, H = 8, 2, 32  # seq=8, batch=2, hidden=32
    x = jax.random.normal(k_x, (T, B, H), dtype=jnp.float32)

    dropout_p = 0.5
    y = locked_dropout(x, dropout=dropout_p, key=k_mask, training=True)
    y = jax.block_until_ready(y)

    # Sanity checks of LockedDropout semantics.
    y_np = np.asarray(y)
    x_np = np.asarray(x)
    scale = 1.0 / (1.0 - dropout_p)

    # Every output element is either 0 or scaled input.
    zero_or_scaled = np.isclose(y_np, 0.0) | np.isclose(y_np, x_np * scale)
    assert zero_or_scaled.all(), "output must be 0 or x/(1-p)"

    # The dropout mask is identical ("locked") across the time dimension.
    kept = ~np.isclose(y_np, 0.0)
    assert (kept == kept[0:1]).all(), "mask must be shared across time steps"

    # Eval mode / p=0 are identity.
    y_eval = jax.block_until_ready(
        locked_dropout(x, dropout=dropout_p, training=False)
    )
    assert np.array_equal(np.asarray(y_eval), x_np)
    y_p0 = jax.block_until_ready(locked_dropout(x, dropout=0.0, training=True))
    assert np.array_equal(np.asarray(y_p0), x_np)

    print("KERNEL_OK")
</pallas_src>

<mosaic_0001>
module attributes {stable_mosaic.version = 11 : i64} {
  func.func @_locked_dropout_kernel(%arg0: i32, %arg1: memref<8x64xf32, #tpu.memory_space<vmem>>, %arg2: memref<1x64xf32, #tpu.memory_space<vmem>>, %arg3: memref<8x64xf32, #tpu.memory_space<vmem>>) attributes {dimension_semantics = [#tpu.dimension_semantics<parallel>], iteration_bounds = array<i64: 1>, scalar_prefetch = 0 : i64, scratch_operands = 0 : i64, tpu.core_type = #tpu.core_type<tc>, window_params = [{transform_indices = @transform_0, window_bounds = array<i64: 8, 64>}, {pipeline_mode = #tpu.pipeline_mode<synchronous>, transform_indices = @transform_1, window_bounds = array<i64: 1, 64>}, {transform_indices = @transform_2, window_bounds = array<i64: 8, 64>}]} {
    %c0 = arith.constant 0 : index
    %c0_0 = arith.constant 0 : index
    %0 = vector.load %arg1[%c0, %c0_0] : memref<8x64xf32, #tpu.memory_space<vmem>>, vector<8x64xf32>
    %c0_1 = arith.constant 0 : index
    %c0_2 = arith.constant 0 : index
    %1 = vector.load %arg2[%c0_1, %c0_2] : memref<1x64xf32, #tpu.memory_space<vmem>>, vector<1x64xf32>
    %2 = vector.broadcast %1 : vector<1x64xf32> to vector<8x64xf32>
    %3 = arith.mulf %0, %2 : vector<8x64xf32>
    %c0_3 = arith.constant 0 : index
    %c0_4 = arith.constant 0 : index
    %4 = vector.load %arg3[%c0_3, %c0_4] : memref<8x64xf32, #tpu.memory_space<vmem>>, vector<8x64xf32>
    tpu.vector_store %arg3[%c0_3, %c0_4], %3 {strides = array<i32>} : memref<8x64xf32, #tpu.memory_space<vmem>>, vector<8x64xf32>,
    return
  }
  func.func @transform_0(%arg0: i32) -> (i32, i32) {
    %c0_i32 = arith.constant 0 : i32
    %c0_i32_0 = arith.constant 0 : i32
    return %arg0, %c0_i32 : i32, i32
  }
  func.func @transform_1(%arg0: i32) -> (i32, i32) {
    %c0_i32 = arith.constant 0 : i32
    %c0_i32_0 = arith.constant 0 : i32
    %c0_i32_1 = arith.constant 0 : i32
    return %c0_i32, %c0_i32_0 : i32, i32
  }
  func.func @transform_2(%arg0: i32) -> (i32, i32) {
    %c0_i32 = arith.constant 0 : i32
    %c0_i32_0 = arith.constant 0 : i32
    return %arg0, %c0_i32 : i32, i32
  }
}

</mosaic_0001>

<bundles_post_ra>
// kernel: tpu_custom_call.1
= control target key start
LH: loop header
LB: loop body
LE: loop exit
PB: predicated region body
PF: predicated region fallthrough
CT: control target
= control target key end

     0   :  { %7 = vsyncpa [#allocation3], 0  ;;  %s123_s0 = inlined_call_operand.hbm [shape: f32[8,64], index: 0, kind: input, shape index: {}]   ;;  %s124_s1 = inlined_call_operand.vmem [shape: f32[1,64], index: 1, kind: input, shape index: {}]   ;;  %s125_s2 = inlined_call_operand.hbm [shape: f32[8,64], index: 2, kind: output, shape index: {}]  }
   0x1   :  { %8 = vsyncpa [#allocation4], 0  ;;  %s97_s9 = smov [#allocation2]  }
   0x2   :  { %s15_s10 = sshll.u32 %s97_s9, 4  ;;  %s16_s10 = int_to_ptr.vmem [resolvable:$true] %s15_s10 }
   0x3   :  { %s61_s11 = scalar_lea.vmem %s16_s10, 128  ;;  %p66_p1 = scmp.lt.s32.totalorder %s16_s10, %s16_s10 }
   0x4   :  { %p62_p0 = scmp.ne.s32.totalorder %s16_s10, %s61_s11  ;;  %p67_p2 = scmp.lt.s32.totalorder %s61_s11, %s61_s11 }
   0x6   :  { %p68_p3 = por %p67_p2, %p66_p1 }
   0x8   :  { %p69_p4 = pnand %p68_p3, %p62_p0 }
   0xa   :  { %72 = shalt.err (!%p69_p4)
}
   0xb   :  { %18 = dma.hbm_to_vmem [thread:$0]  %s123_s0, 128, %s16_s10, [#allocation3]  }
   0xc   :  { %93 = dma.done.wait [#allocation3], 128  }
   0xd   :  { %94 = vsyncadd [#allocation3], 4294967168  ;;  %s98_s14 = smov [#allocation5]   ;;  %v24_v0 = vld [vmem:[#allocation2] sm:$0xff]  ;;  %vm33_vm0 = vcmask 523264  }
   0xe   :  { %s41_s15 = sshll.u32 %s98_s14, 4  ;;  %v50_v1 = vld [vmem:[%s124_s1] ss:$0 sm:$0xff]  ;;  %s42_s15 = int_to_ptr.vmem [resolvable:$true] %s41_s15 }
   0xf   :  { %v32_v2 = vmul.f32 %v50_v1, %v24_v0  ;;  %s73_s18 = scalar_lea.vmem %s42_s15, 128  ;;  %p78_p6 = scmp.lt.s32.totalorder %s42_s15, %s42_s15 }
  0x10   :  { %p74_p5 = scmp.ne.s32.totalorder %s42_s15, %s73_s18  ;;  %p79_p7 = scmp.lt.s32.totalorder %s73_s18, %s73_s18 }
  0x11   :  { %34 = vst.msk [vmem:[#allocation5] sm:$0xff] %vm33_vm0, %v32_v2 }
  0x12   :  { %p80_p8 = por %p79_p7, %p78_p6 }
  0x14   :  { %p81_p9 = pnand %p80_p8, %p74_p5 }
  0x16   :  { %84 = shalt.err (!%p81_p9)
}
  0x17   :  { %44 = dma.vmem_to_hbm [thread:$0]  %s42_s15, 128, %s125_s2, [#allocation4]  }
  0x18   :  { %95 = dma.done.wait [#allocation4], 128  }
  0x19   :  { %96 = vsyncadd [#allocation4], 4294967168 }
  0x1a   :  { %48 = vsyncpa [#allocation3], 1 }
  0x1b   :  { %49 = vsyncpa [#allocation4], 1 }

</bundles_post_ra>
